<compile_context>
chip_gen: v6e
topology: v6e:2x2x1
jax: 0.10.0
libtpu: 0.0.40
codegen_flags: <defaults>
</compile_context>

<pallas_src>
import jax
import jax.numpy as jnp
from jax import lax
from jax.experimental import pallas as pl
from jax.experimental.pallas import tpu as pltpu


def _infonce_kernel(temp_ref, a_ref, p_ref, out_ref, m_sc, l_sc, diag_sc):
    qi = pl.program_id(0)
    ki = pl.program_id(1)
    nk = pl.num_programs(1)

    @pl.when(ki == 0)
    def _init():
        m_sc[...] = jnp.full_like(m_sc, -jnp.inf)
        l_sc[...] = jnp.zeros_like(l_sc)
        diag_sc[...] = jnp.zeros_like(diag_sc)

    eps = jnp.float32(1e-6)
    inv_t = 1.0 / temp_ref[0]                       # scalar, once per step

    a = a_ref[...]                                  # [tq, D] (input dtype)
    p = p_ref[...]                                  # [tk, D]
    a32 = a.astype(jnp.float32)
    p32 = p.astype(jnp.float32)

    # Row norms in f32. Clamping each squared norm at eps clamps each norm at
    # sqrt(eps), so the product clamp matches PyTorch's max(||a||*||p||, eps)
    # for all non-degenerate rows.
    inv_an = lax.rsqrt(jnp.maximum(jnp.sum(a32 * a32, axis=-1, keepdims=True), eps))  # [tq,1]
    inv_pn = lax.rsqrt(jnp.maximum(jnp.sum(p32 * p32, axis=-1, keepdims=True), eps))  # [tk,1]

    # Pre-scale rows so the MXU output is already sim / T. Cast back to the
    # input dtype so bf16 inputs keep the bf16 MXU fast path.
    a_s = (a32 * (inv_an * inv_t)).astype(a.dtype)  # [tq, D]
    p_s = (p32 * inv_pn).astype(p.dtype)            # [tk, D]

    # Contract last dims directly (no explicit transpose).
    sim = lax.dot_general(a_s, p_s, (((1,), (1,)), ((), ())),
                          preferred_element_type=jnp.float32)       # [tq, tk]

    # Online, max-shifted logsumexp across key blocks.
    m_prev = m_sc[...]
    m_new = jnp.maximum(m_prev, jnp.max(sim, axis=-1, keepdims=True))  # [tq,1]
    alpha = jnp.exp(m_prev - m_new)
    l_sc[...] = alpha * l_sc[...] + jnp.sum(jnp.exp(sim - m_new), axis=-1, keepdims=True)
    m_sc[...] = m_new

    # Diagonal S[i,i]/T from the block where key rows == query rows
    # (tq == tk so this is exactly ki == qi): an elementwise dot, no masks.
    @pl.when(ki == qi)
    def _diag():
        diag_sc[...] = (jnp.sum(a32 * p32, axis=-1, keepdims=True)
                        * inv_an * inv_pn * inv_t)

    @pl.when(ki == nk - 1)
    def _finalize():
        per_row = m_sc[...] + jnp.log(l_sc[...]) - diag_sc[...]      # [tq,1]
        block_sum = jnp.sum(per_row)                                  # scalar
        # Lane-dense (1,1,128) store; outside we read element [qi,0,0].
        out_ref[...] = jnp.full((1, 1, 128), block_sum, dtype=jnp.float32)


def _pick_tile(b):
    # 256-aligned tiles (good for v6e/v7x MXU); 128 fallback (v5e); else the
    # whole (small) batch in one block.
    for t in (256, 128):
        if b % t == 0:
            return t
    return b


def infonce_loss(anchor, positive, temperature=0.05):
    """anchor, positive: [B, D] float arrays. Returns scalar float32 loss."""
    B, D = anchor.shape
    assert positive.shape == (B, D)
    tq = _pick_tile(B)                 # query tile == key tile (square blocking)
    nq = B // tq

    temp = jnp.asarray(temperature, dtype=jnp.float32).reshape((1,))
    itemsize = jnp.dtype(anchor.dtype).itemsize
    cost = pl.CostEstimate(
        flops=int(2 * B * B * D + 6 * B * D),
        transcendentals=int(B * B),
        bytes_accessed=int(B * D * itemsize * (nq + 1) + nq * 128 * 4),
    )

    out = pl.pallas_call(
        _infonce_kernel,
        out_shape=jax.ShapeDtypeStruct((nq, 1, 128), jnp.float32),
        grid=(nq, nq),
        in_specs=[
            pl.BlockSpec(memory_space=pltpu.SMEM),               # temperature (1,)
            pl.BlockSpec((tq, D), lambda qi, ki: (qi, 0)),       # anchors   [B, D]
            pl.BlockSpec((tq, D), lambda qi, ki: (ki, 0)),       # positives [B, D]
        ],
        out_specs=pl.BlockSpec((1, 1, 128), lambda qi, ki: (qi, 0, 0)),
        scratch_shapes=[
            pltpu.VMEM((tq, 1), jnp.float32),   # m: running row max
            pltpu.VMEM((tq, 1), jnp.float32),   # l: running sum of exp
            pltpu.VMEM((tq, 1), jnp.float32),   # diag: S[i,i]/T
        ],
        compiler_params=pltpu.CompilerParams(
            dimension_semantics=("parallel", "arbitrary"),
            vmem_limit_bytes=32 * 1024 * 1024,
        ),
        cost_estimate=cost,
    )(temp, anchor, positive)

    # Each query block wrote its partial sum of (log_z - diag); finish the mean.
    return jnp.sum(out[:, 0, 0]) / B


def _infonce_ref(anchor, positive, temperature=0.05):
    # Pure-JAX reference mirroring the PyTorch loop.
    eps = 1e-6
    a = anchor.astype(jnp.float32)
    p = positive.astype(jnp.float32)
    a_n = jnp.linalg.norm(a, axis=-1, keepdims=True)
    p_n = jnp.linalg.norm(p, axis=-1, keepdims=True)
    sim = (a @ p.T) / jnp.maximum(a_n * p_n.T, eps) / temperature
    return jnp.mean(jnp.log(jnp.sum(jnp.exp(sim), axis=-1)) - jnp.diag(sim))


if __name__ == "__main__":
    key = jax.random.PRNGKey(0)

    # Case 1: tiny demo shape (single-block path).
    k1, k2, k3, k4 = jax.random.split(key, 4)
    B, D = 8, 128
    anchor = jax.random.normal(k1, (B, D), dtype=jnp.float32)
    positive = anchor + 0.1 * jax.random.normal(k2, (B, D), dtype=jnp.float32)
    loss = jax.block_until_ready(infonce_loss(anchor, positive, temperature=0.05))
    ref = _infonce_ref(anchor, positive, temperature=0.05)
    assert jnp.isfinite(loss), "non-finite loss"
    assert jnp.allclose(loss, ref, rtol=1e-4, atol=1e-4), (loss, ref)

    # Case 2: multi-block path (2x2 grid, exercises online logsumexp + diag block).
    B2, D2 = 512, 128
    anchor2 = jax.random.normal(k3, (B2, D2), dtype=jnp.float32)
    positive2 = anchor2 + 0.1 * jax.random.normal(k4, (B2, D2), dtype=jnp.float32)
    loss2 = jax.block_until_ready(infonce_loss(anchor2, positive2, temperature=0.05))
    ref2 = _infonce_ref(anchor2, positive2, temperature=0.05)
    assert jnp.isfinite(loss2), "non-finite loss (tiled)"
    assert jnp.allclose(loss2, ref2, rtol=1e-4, atol=1e-4), (loss2, ref2)

    print("KERNEL_OK")
</pallas_src>

<mosaic_0001>
module attributes {stable_mosaic.version = 11 : i64} {
  func.func @_infonce_kernel(%arg0: i32, %arg1: i32, %arg2: memref<1xf32, #tpu.memory_space<smem>>, %arg3: memref<8x128xf32, #tpu.memory_space<vmem>>, %arg4: memref<8x128xf32, #tpu.memory_space<vmem>>, %arg5: memref<1x1x128xf32, #tpu.memory_space<vmem>>, %arg6: memref<8x1xf32, #tpu.memory_space<vmem>>, %arg7: memref<8x1xf32, #tpu.memory_space<vmem>>, %arg8: memref<8x1xf32, #tpu.memory_space<vmem>>) attributes {dimension_semantics = [#tpu.dimension_semantics<parallel>, #tpu.dimension_semantics<arbitrary>], iteration_bounds = array<i64: 1, 1>, scalar_prefetch = 0 : i64, scratch_operands = 3 : i64, tpu.core_type = #tpu.core_type<tc>, window_params = [{transform_indices = @transform_0, window_bounds = array<i64: 1>}, {transform_indices = @transform_1, window_bounds = array<i64: 8, 128>}, {transform_indices = @transform_2, window_bounds = array<i64: 8, 128>}, {transform_indices = @transform_3, window_bounds = array<i64: 1, 1, 128>}]} {
    %c0_i32 = arith.constant 0 : i32
    %0 = arith.cmpi eq, %arg1, %c0_i32 : i32
    %1 = arith.extui %0 : i1 to i32
    %c0_i32_0 = arith.constant 0 : i32
    %2 = arith.cmpi ne, %1, %c0_i32_0 : i32
    scf.if %2 {
      %cst_23 = arith.constant 0xFF800000 : f32
      %48 = vector.broadcast %cst_23 : f32 to vector<8x1xf32>
      %c0_24 = arith.constant 0 : index
      %c0_25 = arith.constant 0 : index
      %49 = vector.load %arg6[%c0_24, %c0_25] : memref<8x1xf32, #tpu.memory_space<vmem>>, vector<8x1xf32>
      tpu.vector_store %arg6[%c0_24, %c0_25], %48 {strides = array<i32>} : memref<8x1xf32, #tpu.memory_space<vmem>>, vector<8x1xf32>,
      %cst_26 = arith.constant 0.000000e+00 : f32
      %50 = vector.broadcast %cst_26 : f32 to vector<8x1xf32>
      %c0_27 = arith.constant 0 : index
      %c0_28 = arith.constant 0 : index
      %51 = vector.load %arg7[%c0_27, %c0_28] : memref<8x1xf32, #tpu.memory_space<vmem>>, vector<8x1xf32>
      tpu.vector_store %arg7[%c0_27, %c0_28], %50 {strides = array<i32>} : memref<8x1xf32, #tpu.memory_space<vmem>>, vector<8x1xf32>,
      %cst_29 = arith.constant 0.000000e+00 : f32
      %52 = vector.broadcast %cst_29 : f32 to vector<8x1xf32>
      %c0_30 = arith.constant 0 : index
      %c0_31 = arith.constant 0 : index
      %53 = vector.load %arg8[%c0_30, %c0_31] : memref<8x1xf32, #tpu.memory_space<vmem>>, vector<8x1xf32>
      tpu.vector_store %arg8[%c0_30, %c0_31], %52 {strides = array<i32>} : memref<8x1xf32, #tpu.memory_space<vmem>>, vector<8x1xf32>,
    } else {
    }
    %c0 = arith.constant 0 : index
    %3 = memref.load %arg2[%c0] : memref<1xf32, #tpu.memory_space<smem>>
    %cst = arith.constant 1.000000e+00 : f32
    %4 = arith.divf %cst, %3 : f32
    %c0_1 = arith.constant 0 : index
    %c0_2 = arith.constant 0 : index
    %5 = vector.load %arg3[%c0_1, %c0_2] : memref<8x128xf32, #tpu.memory_space<vmem>>, vector<8x128xf32>
    %c0_3 = arith.constant 0 : index
    %c0_4 = arith.constant 0 : index
    %6 = vector.load %arg4[%c0_3, %c0_4] : memref<8x128xf32, #tpu.memory_space<vmem>>, vector<8x128xf32>
    %7 = arith.mulf %5, %5 : vector<8x128xf32>
    %cst_5 = arith.constant dense<0.000000e+00> : vector<8xf32>
    %8 = vector.multi_reduction <add>, %7, %cst_5 [1] : vector<8x128xf32> to vector<8xf32>
    %9 = vector.shape_cast %8 : vector<8xf32> to vector<8x1xf32>
    %cst_6 = arith.constant 9.99999997E-7 : f32
    %10 = vector.broadcast %cst_6 : f32 to vector<8x1xf32>
    %11 = arith.maximumf %9, %10 : vector<8x1xf32>
    %12 = math.rsqrt %11 : vector<8x1xf32>
    %13 = arith.mulf %6, %6 : vector<8x128xf32>
    %cst_7 = arith.constant dense<0.000000e+00> : vector<8xf32>
    %14 = vector.multi_reduction <add>, %13, %cst_7 [1] : vector<8x128xf32> to vector<8xf32>
    %15 = vector.shape_cast %14 : vector<8xf32> to vector<8x1xf32>
    %cst_8 = arith.constant 9.99999997E-7 : f32
    %16 = vector.broadcast %cst_8 : f32 to vector<8x1xf32>
    %17 = arith.maximumf %15, %16 : vector<8x1xf32>
    %18 = math.rsqrt %17 : vector<8x1xf32>
    %19 = vector.broadcast %4 : f32 to vector<8x1xf32>
    %20 = arith.mulf %12, %19 : vector<8x1xf32>
    %21 = vector.broadcast %20 : vector<8x1xf32> to vector<8x128xf32>
    %22 = arith.mulf %5, %21 : vector<8x128xf32>
    %23 = vector.broadcast %18 : vector<8x1xf32> to vector<8x128xf32>
    %24 = arith.mulf %6, %23 : vector<8x128xf32>
    %cst_9 = arith.constant dense<0.000000e+00> : vector<8x8xf32>
    %25 = tpu.matmul %22, %24, %cst_9 {dimension_numbers = #tpu.dot_dimension_numbers<[1], [1], [0], [0], [0, 0, 1, 0], [], []>} : vector<8x128xf32>, vector<8x128xf32>, vector<8x8xf32> -> vector<8x8xf32>
    %c0_10 = arith.constant 0 : index
    %c0_11 = arith.constant 0 : index
    %26 = vector.load %arg6[%c0_10, %c0_11] : memref<8x1xf32, #tpu.memory_space<vmem>>, vector<8x1xf32>
    %cst_12 = arith.constant dense<0xFF800000> : vector<8xf32>
    %27 = vector.multi_reduction <maximumf>, %25, %cst_12 [1] : vector<8x8xf32> to vector<8xf32>
    %28 = vector.shape_cast %27 : vector<8xf32> to vector<8x1xf32>
    %29 = arith.maximumf %26, %28 : vector<8x1xf32>
    %30 = arith.subf %26, %29 : vector<8x1xf32>
    %31 = math.exp %30 : vector<8x1xf32>
    %c0_13 = arith.constant 0 : index
    %c0_14 = arith.constant 0 : index
    %32 = vector.load %arg7[%c0_13, %c0_14] : memref<8x1xf32, #tpu.memory_space<vmem>>, vector<8x1xf32>
    %33 = arith.mulf %31, %32 : vector<8x1xf32>
    %34 = vector.broadcast %29 : vector<8x1xf32> to vector<8x8xf32>
    %35 = arith.subf %25, %34 : vector<8x8xf32>
    %36 = math.exp %35 : vector<8x8xf32>
    %cst_15 = arith.constant dense<0.000000e+00> : vector<8xf32>
    %37 = vector.multi_reduction <add>, %36, %cst_15 [1] : vector<8x8xf32> to vector<8xf32>
    %38 = vector.shape_cast %37 : vector<8xf32> to vector<8x1xf32>
    %39 = arith.addf %33, %38 : vector<8x1xf32>
    %c0_16 = arith.constant 0 : index
    %c0_17 = arith.constant 0 : index
    %40 = vector.load %arg7[%c0_16, %c0_17] : memref<8x1xf32, #tpu.memory_space<vmem>>, vector<8x1xf32>
    tpu.vector_store %arg7[%c0_16, %c0_17], %39 {strides = array<i32>} : memref<8x1xf32, #tpu.memory_space<vmem>>, vector<8x1xf32>,
    %c0_18 = arith.constant 0 : index
    %c0_19 = arith.constant 0 : index
    %41 = vector.load %arg6[%c0_18, %c0_19] : memref<8x1xf32, #tpu.memory_space<vmem>>, vector<8x1xf32>
    tpu.vector_store %arg6[%c0_18, %c0_19], %29 {strides = array<i32>} : memref<8x1xf32, #tpu.memory_space<vmem>>, vector<8x1xf32>,
    %42 = arith.cmpi eq, %arg1, %arg0 : i32
    %43 = arith.extui %42 : i1 to i32
    %c0_i32_20 = arith.constant 0 : i32
    %44 = arith.cmpi ne, %43, %c0_i32_20 : i32
    scf.if %44 {
      %48 = arith.mulf %5, %6 : vector<8x128xf32>
      %cst_23 = arith.constant dense<0.000000e+00> : vector<8xf32>
      %49 = vector.multi_reduction <add>, %48, %cst_23 [1] : vector<8x128xf32> to vector<8xf32>
      %50 = vector.shape_cast %49 : vector<8xf32> to vector<8x1xf32>
      %51 = arith.mulf %50, %12 : vector<8x1xf32>
      %52 = arith.mulf %51, %18 : vector<8x1xf32>
      %53 = vector.broadcast %4 : f32 to vector<8x1xf32>
      %54 = arith.mulf %52, %53 : vector<8x1xf32>
      %c0_24 = arith.constant 0 : index
      %c0_25 = arith.constant 0 : index
      %55 = vector.load %arg8[%c0_24, %c0_25] : memref<8x1xf32, #tpu.memory_space<vmem>>, vector<8x1xf32>
      tpu.vector_store %arg8[%c0_24, %c0_25], %54 {strides = array<i32>} : memref<8x1xf32, #tpu.memory_space<vmem>>, vector<8x1xf32>,
    } else {
    }
    %c0_i32_21 = arith.constant 0 : i32
    %45 = arith.cmpi eq, %arg1, %c0_i32_21 : i32
    %46 = arith.extui %45 : i1 to i32
    %c0_i32_22 = arith.constant 0 : i32
    %47 = arith.cmpi ne, %46, %c0_i32_22 : i32
    scf.if %47 {
      %c0_23 = arith.constant 0 : index
      %c0_24 = arith.constant 0 : index
      %48 = vector.load %arg6[%c0_23, %c0_24] : memref<8x1xf32, #tpu.memory_space<vmem>>, vector<8x1xf32>
      %c0_25 = arith.constant 0 : index
      %c0_26 = arith.constant 0 : index
      %49 = vector.load %arg7[%c0_25, %c0_26] : memref<8x1xf32, #tpu.memory_space<vmem>>, vector<8x1xf32>
      %50 = math.log %49 : vector<8x1xf32>
      %51 = arith.addf %48, %50 : vector<8x1xf32>
      %c0_27 = arith.constant 0 : index
      %c0_28 = arith.constant 0 : index
      %52 = vector.load %arg8[%c0_27, %c0_28] : memref<8x1xf32, #tpu.memory_space<vmem>>, vector<8x1xf32>
      %53 = arith.subf %51, %52 : vector<8x1xf32>
      %54 = vector.shape_cast %53 : vector<8x1xf32> to vector<1x8x1xf32>
      %cst_29 = arith.constant dense<0.000000e+00> : vector<1xf32>
      %55 = vector.multi_reduction <add>, %54, %cst_29 [1, 2] : vector<1x8x1xf32> to vector<1xf32>
      %56 = vector.shape_cast %55 : vector<1xf32> to vector<1x1x1xf32>
      %57 = vector.extract %56[0, 0, 0] : f32 from vector<1x1x1xf32>
      %58 = vector.broadcast %57 : f32 to vector<1x1x128xf32>
      %c0_30 = arith.constant 0 : index
      %c0_31 = arith.constant 0 : index
      %c0_32 = arith.constant 0 : index
      %59 = vector.load %arg5[%c0_30, %c0_31, %c0_32] : memref<1x1x128xf32, #tpu.memory_space<vmem>>, vector<1x1x128xf32>
      tpu.vector_store %arg5[%c0_30, %c0_31, %c0_32], %58 {strides = array<i32>} : memref<1x1x128xf32, #tpu.memory_space<vmem>>, vector<1x1x128xf32>,
    } else {
    }
    return
  }
  func.func @transform_0(%arg0: i32, %arg1: i32) -> i32 {
    %c0_i32 = arith.constant 0 : i32
    %c0_i32_0 = arith.constant 0 : i32
    return %c0_i32 : i32
  }
  func.func @transform_1(%arg0: i32, %arg1: i32) -> (i32, i32) {
    %c0_i32 = arith.constant 0 : i32
    %c0_i32_0 = arith.constant 0 : i32
    return %arg0, %c0_i32 : i32, i32
  }
  func.func @transform_2(%arg0: i32, %arg1: i32) -> (i32, i32) {
    %c0_i32 = arith.constant 0 : i32
    %c0_i32_0 = arith.constant 0 : i32
    return %arg1, %c0_i32 : i32, i32
  }
  func.func @transform_3(%arg0: i32, %arg1: i32) -> (i32, i32, i32) {
    %c0_i32 = arith.constant 0 : i32
    %c0_i32_0 = arith.constant 0 : i32
    %c0_i32_1 = arith.constant 0 : i32
    return %arg0, %c0_i32, %c0_i32_0 : i32, i32, i32
  }
}

</mosaic_0001>

<bundles_post_ra>
// kernel: tpu_custom_call.1
= control target key start
LH: loop header
LB: loop body
LE: loop exit
PB: predicated region body
PF: predicated region fallthrough
CT: control target
= control target key end

     0   :  { %9 = vsyncpa [#allocation7], 0  ;;  %s362_s0 = inlined_call_operand.<no memory space> [shape: f32[1], index: 0, kind: input, shape index: {}]   ;;  %s363_s1 = inlined_call_operand.hbm [shape: f32[8,128], index: 1, kind: input, shape index: {}]   ;;  %s364_s2 = inlined_call_operand.hbm [shape: f32[8,128], index: 2, kind: input, shape index: {}]   ;;  %s365_s3 = inlined_call_operand.hbm [shape: f32[1,1,128], index: 3, kind: output, shape index: {}]  }
   0x1   :  { %10 = vsyncpa [#allocation10], 0 }
   0x2   :  { %11 = vsyncpa [#allocation8], 0  ;;  %s311_s12 = smov [#allocation6]   ;;  %s312_s14 = smov [#allocation9]  }
   0x3   :  { %s20_s13 = sshll.u32 %s311_s12, 4  ;;  %s30_s15 = sshll.u32 %s312_s14, 4  ;;  %s21_s13 = int_to_ptr.vmem [resolvable:$true] %s20_s13  ;;  %s31_s15 = int_to_ptr.vmem [resolvable:$true] %s30_s15 }
   0x4   :  { %s253_s16 = scalar_lea.vmem %s21_s13, 128  ;;  %p258_p1 = scmp.lt.s32.totalorder %s21_s13, %s21_s13 }
   0x5   :  { %p254_p0 = scmp.ne.s32.totalorder %s21_s13, %s253_s16  ;;  %p259_p2 = scmp.lt.s32.totalorder %s253_s16, %s253_s16 }
   0x7   :  { %p260_p3 = por %p259_p2, %p258_p1 }
   0x9   :  { %p261_p4 = pnand %p260_p3, %p254_p0 }
   0xb   :  { %264 = shalt.err (!%p261_p4)
}
   0xc   :  { %23 = dma.hbm_to_vmem [thread:$0]  %s363_s1, 128, %s21_s13, [#allocation7]  }
   0xd   :  { %s273_s19 = scalar_lea.vmem %s31_s15, 128  ;;  %p278_p6 = scmp.lt.s32.totalorder %s31_s15, %s31_s15 }
   0xe   :  { %p274_p5 = scmp.ne.s32.totalorder %s31_s15, %s273_s19  ;;  %p279_p7 = scmp.lt.s32.totalorder %s273_s19, %s273_s19 }
  0x10   :  { %p280_p8 = por %p279_p7, %p278_p6 }
  0x12   :  { %p281_p9 = pnand %p280_p8, %p274_p5 }
  0x14   :  { %284 = shalt.err (!%p281_p9)
}
  0x15   :  { %33 = dma.hbm_to_vmem [thread:$0]  %s364_s2, 128, %s31_s15, [#allocation10]  }
  0x16   :  { %305 = dma.done.wait [#allocation7], 128  }
  0x17   :  { %306 = vsyncadd [#allocation7], 4294967168 }
  0x18   :  { %307 = dma.done.wait [#allocation10], 128  }
  0x19   :  { %308 = vsyncadd [#allocation10], 4294967168  ;;  %v49_v0 = vstv %s362_s0  ;;  %v53_v1 = vld [vmem:[#allocation9] sm:$0xff]  ;;  %v52_v2 = vld [vmem:[#allocation6] sm:$0xff]  ;;  %vm44_vm0 = vcmask 7168   ;;  %v313_v6 = vmov 0.0  }
  0x1a   :  { %233 = vrcp.f32 %v49_v0  ;;  %v59_v3 = vmul.f32 %v53_v1, %v53_v1  ;;  %v54_v4 = vmul.f32 %v52_v2, %v52_v2  ;;  %46 = vst.msk [vmem:[#allocation3] sm:$0xff] %vm44_vm0, %v313_v6  ;;  %47 = vst.msk [vmem:[#allocation4] sm:$0xff] %vm44_vm0, %v313_v6  ;;  %215 = vmatprep.subr.mxu0 %v313_v6  ;;  %vm314_vm1 = vmmov 0   ;;  %s317_s1 = smov [#allocation11]  }
  0x1b   :  { %217 = vmatprep.mubr.msk.f32.mxu0 %vm314_vm1, %v313_v6  ;;  %v315_v17 = vmov -inf   ;;  %vm139_vm2 = vcmask 64512   ;;  %v316_v21 = vmov 0   ;;  %v168_v31 = vmul.f32 %v53_v1, %v52_v2  ;;  %s203_s2 = sshll.u32 %s317_s1, 4  ;;  %s204_s2 = int_to_ptr.vmem [resolvable:$true] %s203_s2 }
  0x1c   :  { %60 = vadd.xlane.f32.xlu0 %v59_v3  ;;  %45 = vst.msk [vmem:[#allocation2] sm:$0xff] %vm44_vm0, %v315_v17  ;;  %231 = vset.pattern.permute.xlu1 %v316_v21  ;;  %s285_s25 = scalar_lea.vmem %s204_s2, 16  ;;  %s289_s26 = scalar_lea.vmem %s204_s2, 32 }
  0x1d   :  { %232 = vset.pattern.permute.xlu0 %v316_v21  ;;  %p286_p10 = scmp.ne.s32.totalorder %s204_s2, %s285_s25  ;;  %p290_p11 = scmp.lt.s32.totalorder %s204_s2, %s204_s2 }
  0x1e   :  { %p291_p12 = scmp.lt.s32.totalorder %s289_s26, %s285_s25 }
  0x20   :  { %55 = vadd.xlane.f32.xlu0 %v54_v4  ;;  %p292_p13 = por %p291_p12, %p290_p11 }
  0x21   :  { %v147_v34 = vld [vmem:[#allocation3] sm:$0xff] }
  0x22   :  { %p293_p0 = pnand %p292_p13, %p286_p10 }
  0x23   :  { %v138_v22 = vld [vmem:[#allocation2] sm:$0xff] }
  0x27   :  { %v234_v5 = vpop.eup %233 }
  0x28   :  { %220 = vpush %v234_v5 }
  0x59   :  { %s349_s0 = spop %220 }
  0x5a   :  { %v64_v13 = vstv %s349_s0 }
  0xa5   :  { %v61_v7 = vpop.xlane.xlu0 %60 }
  0xa6   :  { %v62_v8 = vmax.f32 %v61_v7, 1e-06 }
  0xa8   :  { %235 = vrsqrt.f32 %v62_v8 }
  0xa9   :  { %v56_v9 = vpop.xlane.xlu0 %55 }
  0xaa   :  { %v57_v10 = vmax.f32 %v56_v9, 1e-06 }
  0xac   :  { %237 = vrsqrt.f32 %v57_v10 }
  0xb5   :  { %v236_v11 = vpop.eup %235 }
  0xb6   :  { %v67_v12 = vmul.f32 %v236_v11, %v53_v1 }
  0xb8   :  { %216 = vmatpush3.xpose.msra.mxu0 %v67_v12 }
  0xb9   :  { %v238_v14 = vpop.eup %237 }
  0xba   :  { %v65_v15 = vmul.f32 %v238_v14, %v64_v13 }
  0xbc   :  { %v66_v16 = vmul.f32 %v65_v15, %v52_v2 }
  0xbe   :  { %218 = vmatmul.mubr.f32.vlgmr.msra.gmra.mxu0 %v66_v16 }
 0x17e   :  { %v134_v18 = vpop.f32.mrf.mxu0 }
 0x17f   :  { %v140_v19 = vsel %vm139_vm2, %v134_v18, -inf }
 0x180   :  { %141 = vmax.xlane.f32.xlu1 %v140_v19  ;;  %v219_v20 = vpop.f32.mrf.mxu0 }
 0x209   :  { %v142_v23 = vpop.xlane.xlu1 %141 }
 0x20a   :  { %v143_v24 = vmax.f32 %v138_v22, %v142_v23 }
 0x20c   :  { %v144_v25 = vsub.f32 %v138_v22, %v143_v24  ;;  %163 = vst.msk [vmem:[#allocation2] sm:$0xff] %vm44_vm0, %v143_v24  ;;  %151 = vperm.xlu1 %231, %v143_v24  }
 0x20e   :  { %v145_v32 = vmul.f32 1.442695, %v144_v25 }
 0x213   :  { %v178_v45 = vld [vmem:[#allocation2] sm:$0xff] }
 0x287   :  { %v152_v26 = vpop.permute.xlu1 %151 }
 0x288   :  { %v154_v27 = vsub.f32 %v134_v18, %v152_v26 }
 0x28a   :  { %v155_v28 = vmul.f32 1.442695, %v154_v27 }
 0x28c   :  { %239 = vpow2.f32 %v155_v28 }
 0x28d   :  { %241 = vpow2.f32 %v145_v32 }
 0x299   :  { %v240_v29 = vpop.eup %239 }
 0x29a   :  { %v157_v30 = vsel %vm139_vm2, %v240_v29, 0.0  ;;  %v242_v33 = vpop.eup %241 }
 0x29b   :  { %158 = vadd.xlane.f32.xlu0 %v157_v30  ;;  %v148_v35 = vmul.f32 %v242_v33, %v147_v34 }
 0x29f   :  { %169 = vadd.xlane.f32.xlu0 %v168_v31 }
 0x324   :  { %v159_v36 = vpop.xlane.xlu0 %158 }
 0x325   :  { %v160_v37 = vadd.f32 %v159_v36, %v148_v35 }
 0x327   :  { %162 = vst.msk [vmem:[#allocation3] sm:$0xff] %vm44_vm0, %v160_v37 }
 0x328   :  { %v170_v38 = vpop.xlane.xlu0 %169 }
 0x329   :  { %v171_v39 = vmul.f32 %v238_v14, %v170_v38 }
 0x32b   :  { %v172_v40 = vmul.f32 %v236_v11, %v171_v39 }
 0x32d   :  { %v173_v41 = vmul.f32 %v172_v40, %v64_v13 }
 0x32e   :  { %v179_v42 = vld [vmem:[#allocation3] sm:$0xff] }
 0x32f   :  { %174 = vst.msk [vmem:[#allocation4] sm:$0xff] %vm44_vm0, %v173_v41  ;;  %243 = vlog2.f32 %v179_v42 }
 0x336   :  { %v183_v47 = vld [vmem:[#allocation4] sm:$0xff] }
 0x33c   :  { %v244_v43 = vpop.eup %243 }
 0x33d   :  { %v181_v44 = vmul.f32 0.6931472, %v244_v43 }
 0x33f   :  { %v182_v46 = vadd.f32 %v181_v44, %v178_v45 }
 0x341   :  { %v184_v48 = vsub.f32 %v182_v46, %v183_v47 }
 0x343   :  { %v185_v49 = vsel %vm44_vm0, %v184_v48, 0.0 }
 0x344   :  { %186 = vadd.xlane.f32.xlu0 %v185_v49 }
 0x3cd   :  { %v187_v50 = vpop.xlane.xlu0 %186 }
 0x3ce   :  { %v188_v51 = vrot.slane %v187_v50, 4 }
 0x3d0   :  { %v189_v52 = vadd.f32 %v188_v51, %v187_v50 }
 0x3d2   :  { %v190_v53 = vrot.slane %v189_v52, 2 }
 0x3d4   :  { %v191_v54 = vadd.f32 %v190_v53, %v189_v52 }
 0x3d6   :  { %v192_v55 = vrot.slane %v191_v54, 1 }
 0x3d8   :  { %v193_v56 = vadd.f32 %v192_v55, %v191_v54 }
 0x3da   :  { %222 = vpush %v193_v56 }
 0x40b   :  { %s223_s24 = spop %222 }
 0x40c   :  { %v195_v57 = vstv %s223_s24 }
 0x40d   :  { %196 = vst [vmem:[#allocation11] sm:$0x1] %v195_v57 }
 0x40e   :  { %296 = shalt.err (!%p293_p0)
}
 0x40f   :  { %206 = dma.vmem_to_hbm [thread:$0]  %s204_s2, 16, %s365_s3, [#allocation8]  }
 0x410   :  { %309 = dma.done.wait [#allocation8], 16  }
 0x411   :  { %310 = vsyncadd [#allocation8], 4294967280 }
 0x412   :  { %210 = vsyncpa [#allocation7], 1 }
 0x413   :  { %211 = vsyncpa [#allocation10], 1 }
 0x414   :  { %212 = vsyncpa [#allocation8], 1 }

</bundles_post_ra>
